<compile_context>
chip_gen: v5e
topology: v5e:2x2
jax: 0.10.0
libtpu: 0.0.40
codegen_flags: <defaults>
</compile_context>

<pallas_src>
import functools

import jax
import jax.numpy as jnp
from jax.experimental import pallas as pl
from jax.experimental.pallas import tpu as pltpu

_LANE = 128


def _round_up(n, m):
    return ((n + m - 1) // m) * m


def _mlp_kernel(x_ref, w1_ref, b1_ref, w2_ref, b2_ref, w3_ref, b3_ref, o_ref):
    # All refs f32.  x_ref: (TB, obs_dim); o_ref: (TB, 128) lane-dense.
    x = x_ref[...]

    # fc1 + ReLU  (f32 MXU matmul, f32 accumulate)
    h1 = jnp.dot(x, w1_ref[...], preferred_element_type=jnp.float32) + b1_ref[...]
    h1 = jnp.maximum(h1, 0.0)

    # fc2 + ReLU
    h2 = jnp.dot(h1, w2_ref[...], preferred_element_type=jnp.float32) + b2_ref[...]
    h2 = jnp.maximum(h2, 0.0)

    # fc3 (no activation); output block is lane-dense (128 cols, zero-padded).
    o_ref[...] = (
        jnp.dot(h2, w3_ref[...], preferred_element_type=jnp.float32) + b3_ref[...]
    )


@functools.partial(jax.jit, static_argnames=("tb",))
def encoder_forward(x, params, *, tb=1024):
    """x: [B, obs_dim] f32; params: dict of w1,b1,w2,b2,w3,b3 (f32).

    Weights are [in, out]; biases are [1, out].  Returns [B, latent] f32.
    """
    w1, b1 = params["w1"], params["b1"]
    w2, b2 = params["w2"], params["b2"]
    w3, b3 = params["w3"], params["b3"]

    B, obs_dim = x.shape
    h1_dim = w1.shape[1]
    h2_dim = w2.shape[1]
    latent = w3.shape[1]

    # Lane-dense output: pad fc3's output width up to a multiple of 128 lanes
    # so the output store is an unmasked full-lane vst and the output DMA is
    # wide.  (Tiny pad; fused under jit, weights stay resident across steps.)
    n3 = max(_LANE, _round_up(latent, _LANE))
    if n3 != latent:
        w3 = jnp.pad(w3, ((0, 0), (0, n3 - latent)))
        b3 = jnp.pad(b3, ((0, 0), (0, n3 - latent)))

    # Batch tile: large tiles amortize per-grid-step overhead; cap at
    # ceil(B/2) (8-aligned) so there are >= 2 grid steps when B allows it and
    # the "parallel" batch axis can shard across both TensorCores on v7x.
    # No batch padding: the edge block's OOB rows are masked on write.
    TB = min(tb, _round_up(pl.cdiv(B, 2), 8))
    grid = (pl.cdiv(B, TB),)

    # Batch-tiled x / out; weights & biases use constant index_maps so they
    # are DMA'd once and stay resident in VMEM across grid steps.
    x_spec = pl.BlockSpec((TB, obs_dim), lambda i: (i, 0))
    w1_spec = pl.BlockSpec((obs_dim, h1_dim), lambda i: (0, 0))
    b1_spec = pl.BlockSpec((1, h1_dim), lambda i: (0, 0))
    w2_spec = pl.BlockSpec((h1_dim, h2_dim), lambda i: (0, 0))
    b2_spec = pl.BlockSpec((1, h2_dim), lambda i: (0, 0))
    w3_spec = pl.BlockSpec((h2_dim, n3), lambda i: (0, 0))
    b3_spec = pl.BlockSpec((1, n3), lambda i: (0, 0))
    out_spec = pl.BlockSpec((TB, n3), lambda i: (i, 0))

    flops = 2 * B * (obs_dim * h1_dim + h1_dim * h2_dim + h2_dim * n3)
    bytes_accessed = (
        x.size * 4
        + (w1.size + w2.size + w3.size) * 4
        + (b1.size + b2.size + b3.size) * 4
        + B * n3 * 4
    )

    out = pl.pallas_call(
        _mlp_kernel,
        out_shape=jax.ShapeDtypeStruct((B, n3), jnp.float32),
        grid_spec=pltpu.PrefetchScalarGridSpec(
            num_scalar_prefetch=0,
            grid=grid,
            in_specs=[x_spec, w1_spec, b1_spec, w2_spec, b2_spec, w3_spec, b3_spec],
            out_specs=out_spec,
        ),
        compiler_params=pltpu.CompilerParams(
            dimension_semantics=("parallel",),
        ),
        cost_estimate=pl.CostEstimate(
            flops=flops, transcendentals=0, bytes_accessed=bytes_accessed
        ),
    )(x, w1, b1, w2, b2, w3, b3)

    return out[:, :latent] if n3 != latent else out


def init_params(key, obs_dim, latent_dim=32):
    """Deterministic init mimicking PyTorch Linear default (uniform +-1/sqrt(fan_in))."""
    ks = jax.random.split(key, 6)

    def linear(kw, kb, fan_in, fan_out):
        bound = 1.0 / jnp.sqrt(fan_in)
        w = jax.random.uniform(kw, (fan_in, fan_out), jnp.float32, -bound, bound)
        b = jax.random.uniform(kb, (1, fan_out), jnp.float32, -bound, bound)
        return w, b

    w1, b1 = linear(ks[0], ks[1], obs_dim, 128)
    w2, b2 = linear(ks[2], ks[3], 128, 64)
    w3, b3 = linear(ks[4], ks[5], 64, latent_dim)
    return {"w1": w1, "b1": b1, "w2": w2, "b2": b2, "w3": w3, "b3": b3}


def encoder_forward_ref(x, p):
    h1 = jnp.maximum(x @ p["w1"] + p["b1"], 0.0)
    h2 = jnp.maximum(h1 @ p["w2"] + p["b2"], 0.0)
    return h2 @ p["w3"] + p["b3"]


# TODO(synk): feature_extractor=True path (coverage_idx gather), data_augmentation,
# normalize/contrastive_loss and get_knn_sum are auxiliary methods, not part of
# the plain forward pass implemented here.

if __name__ == "__main__":
    key = jax.random.PRNGKey(0)
    k_x, k_p, k_x2 = jax.random.split(key, 3)

    B, OBS_DIM, LATENT = 8, 16, 32
    x = jax.random.normal(k_x, (B, OBS_DIM), dtype=jnp.float32)
    params = init_params(k_p, OBS_DIM, LATENT)

    out = jax.block_until_ready(encoder_forward(x, params))
    ref = encoder_forward_ref(x, params)
    assert out.shape == (B, LATENT)
    # Tolerance covers possible differences in default f32 matmul pass counts
    # between the Pallas MXU lowering and the XLA reference.
    assert jnp.allclose(out, ref, atol=2e-2, rtol=2e-2), "mismatch vs reference (small B)"

    # Larger, non-multiple batch -> exercises the multi-step grid, masked edge
    # block, and the lane-dense padded-output slice.
    B2 = 300
    x2 = jax.random.normal(k_x2, (B2, OBS_DIM), dtype=jnp.float32)
    out2 = jax.block_until_ready(encoder_forward(x2, params))
    ref2 = encoder_forward_ref(x2, params)
    assert out2.shape == (B2, LATENT)
    assert jnp.allclose(out2, ref2, atol=2e-2, rtol=2e-2), "mismatch vs reference (large B)"

    print("KERNEL_OK")
</pallas_src>

<mosaic_0001>
module attributes {stable_mosaic.version = 11 : i64} {
  func.func @_mlp_kernel(%arg0: i32, %arg1: memref<8x16xf32, #tpu.memory_space<vmem>>, %arg2: memref<16x128xf32, #tpu.memory_space<vmem>>, %arg3: memref<1x128xf32, #tpu.memory_space<vmem>>, %arg4: memref<128x64xf32, #tpu.memory_space<vmem>>, %arg5: memref<1x64xf32, #tpu.memory_space<vmem>>, %arg6: memref<64x128xf32, #tpu.memory_space<vmem>>, %arg7: memref<1x128xf32, #tpu.memory_space<vmem>>, %arg8: memref<8x128xf32, #tpu.memory_space<vmem>>) attributes {dimension_semantics = [#tpu.dimension_semantics<parallel>], iteration_bounds = array<i64: 1>, scalar_prefetch = 0 : i64, scratch_operands = 0 : i64, tpu.core_type = #tpu.core_type<tc>, window_params = [{transform_indices = @transform_0, window_bounds = array<i64: 8, 16>}, {pipeline_mode = #tpu.pipeline_mode<synchronous>, transform_indices = @transform_1, window_bounds = array<i64: 16, 128>}, {pipeline_mode = #tpu.pipeline_mode<synchronous>, transform_indices = @transform_2, window_bounds = array<i64: 1, 128>}, {pipeline_mode = #tpu.pipeline_mode<synchronous>, transform_indices = @transform_3, window_bounds = array<i64: 128, 64>}, {pipeline_mode = #tpu.pipeline_mode<synchronous>, transform_indices = @transform_4, window_bounds = array<i64: 1, 64>}, {pipeline_mode = #tpu.pipeline_mode<synchronous>, transform_indices = @transform_5, window_bounds = array<i64: 64, 128>}, {pipeline_mode = #tpu.pipeline_mode<synchronous>, transform_indices = @transform_6, window_bounds = array<i64: 1, 128>}, {transform_indices = @transform_7, window_bounds = array<i64: 8, 128>}]} {
    %c0 = arith.constant 0 : index
    %c0_0 = arith.constant 0 : index
    %0 = vector.load %arg1[%c0, %c0_0] : memref<8x16xf32, #tpu.memory_space<vmem>>, vector<8x16xf32>
    %c0_1 = arith.constant 0 : index
    %c0_2 = arith.constant 0 : index
    %1 = vector.load %arg2[%c0_1, %c0_2] : memref<16x128xf32, #tpu.memory_space<vmem>>, vector<16x128xf32>
    %cst = arith.constant dense<0.000000e+00> : vector<8x128xf32>
    %2 = tpu.matmul %0, %1, %cst {dimension_numbers = #tpu.dot_dimension_numbers<[1], [0], [0], [1], [0, 0, 1, 1], [], []>} : vector<8x16xf32>, vector<16x128xf32>, vector<8x128xf32> -> vector<8x128xf32>
    %c0_3 = arith.constant 0 : index
    %c0_4 = arith.constant 0 : index
    %3 = vector.load %arg3[%c0_3, %c0_4] : memref<1x128xf32, #tpu.memory_space<vmem>>, vector<1x128xf32>
    %4 = vector.broadcast %3 : vector<1x128xf32> to vector<8x128xf32>
    %5 = arith.addf %2, %4 : vector<8x128xf32>
    %cst_5 = arith.constant 0.000000e+00 : f32
    %6 = vector.broadcast %cst_5 : f32 to vector<8x128xf32>
    %7 = arith.maximumf %5, %6 : vector<8x128xf32>
    %c0_6 = arith.constant 0 : index
    %c0_7 = arith.constant 0 : index
    %8 = vector.load %arg4[%c0_6, %c0_7] : memref<128x64xf32, #tpu.memory_space<vmem>>, vector<128x64xf32>
    %cst_8 = arith.constant dense<0.000000e+00> : vector<8x64xf32>
    %9 = tpu.matmul %7, %8, %cst_8 {dimension_numbers = #tpu.dot_dimension_numbers<[1], [0], [0], [1], [0, 0, 1, 1], [], []>} : vector<8x128xf32>, vector<128x64xf32>, vector<8x64xf32> -> vector<8x64xf32>
    %c0_9 = arith.constant 0 : index
    %c0_10 = arith.constant 0 : index
    %10 = vector.load %arg5[%c0_9, %c0_10] : memref<1x64xf32, #tpu.memory_space<vmem>>, vector<1x64xf32>
    %11 = vector.broadcast %10 : vector<1x64xf32> to vector<8x64xf32>
    %12 = arith.addf %9, %11 : vector<8x64xf32>
    %cst_11 = arith.constant 0.000000e+00 : f32
    %13 = vector.broadcast %cst_11 : f32 to vector<8x64xf32>
    %14 = arith.maximumf %12, %13 : vector<8x64xf32>
    %c0_12 = arith.constant 0 : index
    %c0_13 = arith.constant 0 : index
    %15 = vector.load %arg6[%c0_12, %c0_13] : memref<64x128xf32, #tpu.memory_space<vmem>>, vector<64x128xf32>
    %cst_14 = arith.constant dense<0.000000e+00> : vector<8x128xf32>
    %16 = tpu.matmul %14, %15, %cst_14 {dimension_numbers = #tpu.dot_dimension_numbers<[1], [0], [0], [1], [0, 0, 1, 1], [], []>} : vector<8x64xf32>, vector<64x128xf32>, vector<8x128xf32> -> vector<8x128xf32>
    %c0_15 = arith.constant 0 : index
    %c0_16 = arith.constant 0 : index
    %17 = vector.load %arg7[%c0_15, %c0_16] : memref<1x128xf32, #tpu.memory_space<vmem>>, vector<1x128xf32>
    %18 = vector.broadcast %17 : vector<1x128xf32> to vector<8x128xf32>
    %19 = arith.addf %16, %18 : vector<8x128xf32>
    %c0_17 = arith.constant 0 : index
    %c0_18 = arith.constant 0 : index
    %20 = vector.load %arg8[%c0_17, %c0_18] : memref<8x128xf32, #tpu.memory_space<vmem>>, vector<8x128xf32>
    tpu.vector_store %arg8[%c0_17, %c0_18], %19 {strides = array<i32>} : memref<8x128xf32, #tpu.memory_space<vmem>>, vector<8x128xf32>,
    return
  }
  func.func @transform_0(%arg0: i32) -> (i32, i32) {
    %c0_i32 = arith.constant 0 : i32
    %c0_i32_0 = arith.constant 0 : i32
    return %arg0, %c0_i32 : i32, i32
  }
  func.func @transform_1(%arg0: i32) -> (i32, i32) {
    %c0_i32 = arith.constant 0 : i32
    %c0_i32_0 = arith.constant 0 : i32
    %c0_i32_1 = arith.constant 0 : i32
    return %c0_i32, %c0_i32_0 : i32, i32
  }
  func.func @transform_2(%arg0: i32) -> (i32, i32) {
    %c0_i32 = arith.constant 0 : i32
    %c0_i32_0 = arith.constant 0 : i32
    %c0_i32_1 = arith.constant 0 : i32
    return %c0_i32, %c0_i32_0 : i32, i32
  }
  func.func @transform_3(%arg0: i32) -> (i32, i32) {
    %c0_i32 = arith.constant 0 : i32
    %c0_i32_0 = arith.constant 0 : i32
    %c0_i32_1 = arith.constant 0 : i32
    return %c0_i32, %c0_i32_0 : i32, i32
  }
  func.func @transform_4(%arg0: i32) -> (i32, i32) {
    %c0_i32 = arith.constant 0 : i32
    %c0_i32_0 = arith.constant 0 : i32
    %c0_i32_1 = arith.constant 0 : i32
    return %c0_i32, %c0_i32_0 : i32, i32
  }
  func.func @transform_5(%arg0: i32) -> (i32, i32) {
    %c0_i32 = arith.constant 0 : i32
    %c0_i32_0 = arith.constant 0 : i32
    %c0_i32_1 = arith.constant 0 : i32
    return %c0_i32, %c0_i32_0 : i32, i32
  }
  func.func @transform_6(%arg0: i32) -> (i32, i32) {
    %c0_i32 = arith.constant 0 : i32
    %c0_i32_0 = arith.constant 0 : i32
    %c0_i32_1 = arith.constant 0 : i32
    return %c0_i32, %c0_i32_0 : i32, i32
  }
  func.func @transform_7(%arg0: i32) -> (i32, i32) {
    %c0_i32 = arith.constant 0 : i32
    %c0_i32_0 = arith.constant 0 : i32
    return %arg0, %c0_i32 : i32, i32
  }
}

</mosaic_0001>

<bundles_post_ra>
// kernel: encoder_forward.1
= control target key start
LH: loop header
LB: loop body
LE: loop exit
PB: predicated region body
PF: predicated region fallthrough
CT: control target
= control target key end

     0   :  { %vm34_vm0 = vcmask 130048   ;;  %s319_s0 = inlined_call_operand.vmem [shape: f32[8,16], index: 0, kind: input, shape index: {}]   ;;  %s320_s1 = inlined_call_operand.vmem [shape: f32[16,128], index: 1, kind: input, shape index: {}]   ;;  %s321_s2 = inlined_call_operand.vmem [shape: f32[1,128], index: 2, kind: input, shape index: {}]   ;;  %s322_s3 = inlined_call_operand.vmem [shape: f32[128,64], index: 3, kind: input, shape index: {}]   ;;  %s323_s4 = inlined_call_operand.vmem [shape: f32[1,64], index: 4, kind: input, shape index: {}]   ;;  %s324_s5 = inlined_call_operand.vmem [shape: f32[64,128], index: 5, kind: input, shape index: {}]   ;;  %s325_s6 = inlined_call_operand.vmem [shape: f32[1,128], index: 6, kind: input, shape index: {}]   ;;  %s326_s7 = inlined_call_operand.hbm [shape: f32[8,128], index: 7, kind: output, shape index: {}]  }
   0x1   :  { %v29_v0 = vld [vmem:[%s320_s1 + $0x8] sm:$0xff]  ;;  %v28_v1 = vld [vmem:[%s320_s1] sm:$0xff]  ;;  %v74_v3 = vld [vmem:[%s322_s3 + $0x78] sm:$0xff] }
   0x2   :  { %52 = vmatpush.msra.mxu0 %v29_v0  ;;  %v27_v2 = vld [vmem:[%s319_s0] sm:$0xff]  ;;  %v73_v4 = vld [vmem:[%s322_s3 + $0x70] sm:$0xff]  ;;  %79 = vmatpush.msra.mxu1 %v74_v3  ;;  %v72_v5 = vld [vmem:[%s322_s3 + $0x68] sm:$0xff] }
   0x3   :  { %v71_v6 = vld [vmem:[%s322_s3 + $0x60] sm:$0xff] }
   0x4   :  { %53 = vmatpush.msra.mxu0 %v28_v1  ;;  %80 = vmatpush.msra.mxu1 %v73_v4 }
   0x5   :  { %153 = vmatmul.msk.f32.vlgmr.msra.gmra.mxu0 %vm34_vm0, %v27_v2 }
   0x6   :  { %81 = vmatpush.msra.mxu1 %v72_v5 }
   0x7   :  { %12 = vsyncpa [#allocation3], 0  ;;  %v70_v7 = vld [vmem:[%s322_s3 + $0x58] sm:$0xff]  ;;  %v69_v8 = vld [vmem:[%s322_s3 + $0x50] sm:$0xff]  ;;  %vm112_vm1 = vcmask 523264   ;;  %s185_s9 = smov [#allocation2]  }
   0x8   :  { %82 = vmatpush.msra.mxu1 %v71_v6  ;;  %v68_v9 = vld [vmem:[%s322_s3 + $0x48] sm:$0xff]  ;;  %v67_v10 = vld [vmem:[%s322_s3 + $0x40] sm:$0xff]  ;;  %v66_v11 = vld [vmem:[%s322_s3 + $0x38] sm:$0xff]  ;;  %s142_s10 = sshll.u32 %s185_s9, 4  ;;  %s143_s10 = int_to_ptr.vmem [resolvable:$true] %s142_s10 }
   0x9   :  { %v65_v12 = vld [vmem:[%s322_s3 + $0x30] sm:$0xff]  ;;  %v64_v13 = vld [vmem:[%s322_s3 + $0x28] sm:$0xff]  ;;  %v63_v14 = vld [vmem:[%s322_s3 + $0x20] sm:$0xff] }
   0xa   :  { %83 = vmatpush.msra.mxu1 %v70_v7  ;;  %v62_v15 = vld [vmem:[%s322_s3 + $0x18] sm:$0xff]  ;;  %v61_v16 = vld [vmem:[%s322_s3 + $0x10] sm:$0xff]  ;;  %v60_v17 = vld [vmem:[%s322_s3 + $0x8] sm:$0xff] }
   0xb   :  { %v59_v18 = vld [vmem:[%s322_s3] sm:$0xff]  ;;  %v107_v19 = vld [vmem:[%s324_s5 + $0x38] sm:$0xff]  ;;  %v106_v20 = vld [vmem:[%s324_s5 + $0x30] sm:$0xff] }
   0xc   :  { %84 = vmatpush.msra.mxu1 %v69_v8  ;;  %124 = vmatpush.msra.mxu2 %v107_v19  ;;  %v105_v21 = vld [vmem:[%s324_s5 + $0x28] sm:$0xff]  ;;  %v104_v22 = vld [vmem:[%s324_s5 + $0x20] sm:$0xff]  ;;  %v103_v23 = vld [vmem:[%s324_s5 + $0x18] sm:$0xff] }
   0xd   :  { %v156_v24 = vld [vmem:[%s321_s2] ss:$0 sm:$0xff]  ;;  %v102_v28 = vld [vmem:[%s324_s5 + $0x10] sm:$0xff]  ;;  %v101_v29 = vld [vmem:[%s324_s5 + $0x8] sm:$0xff] }
   0xe   :  { %85 = vmatpush.msra.mxu1 %v68_v9  ;;  %125 = vmatpush.msra.mxu2 %v106_v20  ;;  %v100_v30 = vld [vmem:[%s324_s5] sm:$0xff]  ;;  %s144_s5 = sshll.u32 %s326_s7, 4  ;;  %s145_s5 = int_to_ptr.hbm [resolvable:$true] %s144_s5 }
   0xf   :  { %v157_v31 = vld [vmem:[%s323_s4] ss:$0 sm:$0xff] }
  0x10   :  { %86 = vmatpush.msra.mxu1 %v67_v10  ;;  %126 = vmatpush.msra.mxu2 %v105_v21  ;;  %v158_v35 = vld [vmem:[%s325_s6] ss:$0 sm:$0xff] }
  0x12   :  { %87 = vmatpush.msra.mxu1 %v66_v11  ;;  %127 = vmatpush.msra.mxu2 %v104_v22 }
  0x14   :  { %88 = vmatpush.msra.mxu1 %v65_v12  ;;  %128 = vmatpush.msra.mxu2 %v103_v23 }
  0x16   :  { %89 = vmatpush.msra.mxu1 %v64_v13  ;;  %129 = vmatpush.msra.mxu2 %v102_v28 }
  0x18   :  { %90 = vmatpush.msra.mxu1 %v63_v14  ;;  %130 = vmatpush.msra.mxu2 %v101_v29 }
  0x1a   :  { %91 = vmatpush.msra.mxu1 %v62_v15  ;;  %131 = vmatpush.msra.mxu2 %v100_v30 }
  0x1c   :  { %92 = vmatpush.msra.mxu1 %v61_v16 }
  0x1e   :  { %93 = vmatpush.msra.mxu1 %v60_v17 }
  0x20   :  { %94 = vmatpush.msra.mxu1 %v59_v18 }
  0x82   :  { %v55_v25 = vpop.f32.mrf.mxu0 }
  0x83   :  { %v56_v26 = vadd.f32 %v156_v24, %v55_v25 }
  0x85   :  { %v58_v27 = vmax.f32 %v56_v26, 0.0 }
  0x87   :  { %95 = vmatmul.f32.vlgmr.msra.gmra.mxu1 %v58_v27 }
 0x104   :  { %v96_v32 = vpop.f32.mrf.mxu1 }
 0x105   :  { %v97_v33 = vadd.f32 %v157_v31, %v96_v32 }
 0x107   :  { %v99_v34 = vmax.f32 %v97_v33, 0.0 }
 0x109   :  { %154 = vmatmul.msk.f32.vlgmr.msra.gmra.mxu2 %vm112_vm1, %v99_v34 }
 0x18c   :  { %v133_v36 = vpop.f32.mrf.mxu2 }
 0x18d   :  { %v134_v37 = vadd.f32 %v158_v35, %v133_v36 }
 0x18f   :  { %136 = vst [vmem:[#allocation2] sm:$0xff] %v134_v37 }
 0x190   :  { %147 = dma.vmem_to_hbm [thread:$0]  %s143_s10, 128, %s145_s5, [#allocation3]  }
 0x191   :  { %183 = dma.done.wait [#allocation3], 128  }
 0x192   :  { %184 = vsyncadd [#allocation3], 4294967168 }
 0x193   :  { %152 = vsyncpa [#allocation3], 1 }

</bundles_post_ra>
